<compile_context>
chip_gen: v6e
topology: v6e:2x2x1
jax: 0.10.0
libtpu: 0.0.40
codegen_flags: <defaults>
</compile_context>

<pallas_src>
import functools

import jax
import jax.numpy as jnp
from jax.experimental import pallas as pl
from jax.experimental.pallas import tpu as pltpu


# ----------------------------------------------------------------------------
# helpers
# ----------------------------------------------------------------------------
def _round_up(x, m):
    return ((x + m - 1) // m) * m


def _tile_and_pad(dim, target, align):
    """Pick an aligned tile size <= target and the padded extent it divides."""
    padded = _round_up(dim, align)
    tile = min(target, padded)
    padded = _round_up(padded, tile)
    return tile, padded


def _pick_tile(padded, target, align):
    """Largest align-multiple tile <= target that divides `padded`
    (padded is already a multiple of align)."""
    if padded <= target:
        return padded
    t = (target // align) * align
    while t > align:
        if padded % t == 0:
            return t
        t -= align
    return align


def _pad2d(a, rows, cols, dtype, fill=0):
    a = a.astype(dtype)
    if a.shape == (rows, cols):
        return a
    out = jnp.full((rows, cols), fill, dtype)
    return out.at[: a.shape[0], : a.shape[1]].set(a)


# <= v7x's 64 MiB physical VMEM; conservative (but fine) for v5e/v6e's 128 MiB.
_VMEM_LIMIT = 48 * 1024 * 1024
# Tile targets: 256-multiples feed v6e/v7x's 2x256^2 MXU, still 128-multiples
# for v5e; bf16 operands keep the double-buffered working set well inside the
# VMEM budget even at K-tile 512.
_TM, _TN, _TK = 256, 256, 512


def _m_tile(M):
    """Row tile: 256 for large M, 128 for small M so the 'parallel' M axis
    still splits across v7x's two TensorCores; exact (16-aligned) for tiny M."""
    m_pad0 = _round_up(M, 16)
    target = _TM if m_pad0 >= 2 * _TM else 128
    return _tile_and_pad(M, target, 16)


# ----------------------------------------------------------------------------
# Kernel 1: tiled fused linear  o = epilogue(x @ W + b)
#   epilogue = optional ReLU and/or per-row scale (used for the sgn mask);
#   epilogue math stays f32 (v5e has no bf16 VALU), cast only at the store.
# ----------------------------------------------------------------------------
def _linear_kernel(*refs, relu, scaled):
    if scaled:
        x_ref, w_ref, b_ref, s_ref, o_ref, acc_ref = refs
    else:
        x_ref, w_ref, b_ref, o_ref, acc_ref = refs
        s_ref = None
    k = pl.program_id(2)

    @pl.when(k == 0)
    def _():
        acc_ref[...] = jnp.zeros_like(acc_ref)

    acc_ref[...] += jnp.dot(x_ref[...], w_ref[...],
                            preferred_element_type=jnp.float32)

    @pl.when(k == pl.num_programs(2) - 1)
    def _():
        out = acc_ref[...] + b_ref[...]
        if relu:
            out = jnp.maximum(out, 0.0)
        if scaled:
            out = out * s_ref[...]
        o_ref[...] = out.astype(o_ref.dtype)


def fused_linear(x2d, w_pad, b_pad, *, relu=False, row_scale=None,
                 out_dtype=jnp.float32):
    """W/b are pre-padded (Kp, Np)/(1, Np). Rows beyond M are dropped; padded
    lanes (Np) are kept so downstream kernels consume the slab directly."""
    M, _ = x2d.shape
    Kp, Np = w_pad.shape
    tm, Mp = _m_tile(M)
    tk = _pick_tile(Kp, _TK, 128)
    tn = _pick_tile(Np, _TN, 128)

    xp = _pad2d(x2d, Mp, Kp, jnp.bfloat16)

    in_specs = [
        pl.BlockSpec((tm, tk), lambda i, j, k: (i, k)),
        pl.BlockSpec((tk, tn), lambda i, j, k: (k, j)),
        pl.BlockSpec((1, tn), lambda i, j, k: (0, j)),
    ]
    args = [xp, w_pad, b_pad]
    scaled = row_scale is not None
    if scaled:
        sp = _pad2d(row_scale.reshape(-1, 1), Mp, 1, jnp.float32)
        in_specs.append(pl.BlockSpec((tm, 1), lambda i, j, k: (i, 0)))
        args.append(sp)

    out = pl.pallas_call(
        functools.partial(_linear_kernel, relu=relu, scaled=scaled),
        out_shape=jax.ShapeDtypeStruct((Mp, Np), out_dtype),
        grid=(Mp // tm, Np // tn, Kp // tk),
        in_specs=in_specs,
        out_specs=pl.BlockSpec((tm, tn), lambda i, j, k: (i, j)),
        scratch_shapes=[pltpu.VMEM((tm, tn), jnp.float32)],
        compiler_params=pltpu.CompilerParams(
            dimension_semantics=("parallel", "parallel", "arbitrary"),
            vmem_limit_bytes=_VMEM_LIMIT),
    )(*args)
    return out[:M]


# ----------------------------------------------------------------------------
# Kernel 2: fused decoder head  logits = relu(x @ W1 + b1) @ W2 + b2
#   Two epilogues:
#    (a) logits variant: writes the full (tm, tv) f32 logits tile (2nd pass).
#    (b) argmax variant: V is the last, "arbitrary" grid axis; resident
#        running-max / running-argmax scratch across V tiles -> only the
#        argmax prediction is written, the logits never reach HBM (1st pass).
#   The ReLU hidden activation lives in VMEM scratch in both variants.
# ----------------------------------------------------------------------------
def _decoder_logits_kernel(x_ref, w1_ref, b1_ref, w2_ref, b2_ref, o_ref,
                           hid_ref):
    @pl.when(pl.program_id(1) == 0)
    def _():
        h = jnp.dot(x_ref[...], w1_ref[...], preferred_element_type=jnp.float32)
        h = jnp.maximum(h + b1_ref[...], 0.0)
        hid_ref[...] = h.astype(hid_ref.dtype)

    o_ref[...] = (jnp.dot(hid_ref[...], w2_ref[...],
                          preferred_element_type=jnp.float32) + b2_ref[...])


def _decoder_argmax_kernel(x_ref, w1_ref, b1_ref, w2_ref, b2_ref, pred_ref,
                           hid_ref, mx_ref, idx_ref, *, n_vocab):
    j = pl.program_id(1)

    @pl.when(j == 0)
    def _():
        h = jnp.dot(x_ref[...], w1_ref[...], preferred_element_type=jnp.float32)
        h = jnp.maximum(h + b1_ref[...], 0.0)
        hid_ref[...] = h.astype(hid_ref.dtype)
        mx_ref[...] = jnp.full_like(mx_ref, -jnp.inf)
        idx_ref[...] = jnp.zeros_like(idx_ref)

    logits = (jnp.dot(hid_ref[...], w2_ref[...],
                      preferred_element_type=jnp.float32) + b2_ref[...])
    tv = logits.shape[1]
    col = jax.lax.broadcasted_iota(jnp.int32, logits.shape, 1) + j * tv
    logits = jnp.where(col >= n_vocab, -jnp.inf, logits)      # mask vocab pad

    tile_max = jnp.max(logits, axis=-1, keepdims=True)
    tile_arg = jnp.min(jnp.where(logits >= tile_max, col, jnp.int32(2 ** 30)),
                       axis=-1, keepdims=True)
    better = tile_max > mx_ref[...]        # strict > => first-occurrence argmax
    idx_ref[...] = jnp.where(better, tile_arg, idx_ref[...])
    mx_ref[...] = jnp.maximum(mx_ref[...], tile_max)

    @pl.when(j == pl.num_programs(1) - 1)
    def _():
        pred_ref[...] = jnp.broadcast_to(idx_ref[...], pred_ref.shape)


def _decoder_setup(x2d, w1_pad, w2_pad):
    M, _ = x2d.shape
    Hp = w1_pad.shape[0]
    Vp = w2_pad.shape[1]
    tm, Mp = _m_tile(M)
    tv = _pick_tile(Vp, _TN, 128)
    xp = _pad2d(x2d, Mp, Hp, jnp.bfloat16)
    return xp, M, Mp, tm, Hp, Vp, tv


def _decoder_specs(tm, Hp, tv):
    return [
        pl.BlockSpec((tm, Hp), lambda i, j: (i, 0)),
        pl.BlockSpec((Hp, Hp), lambda i, j: (0, 0)),
        pl.BlockSpec((1, Hp), lambda i, j: (0, 0)),
        pl.BlockSpec((Hp, tv), lambda i, j: (0, j)),
        pl.BlockSpec((1, tv), lambda i, j: (0, j)),
    ]


def fused_decoder_logits(x2d, w1, b1, w2, b2, *, n_vocab):
    # TODO(synk): the hidden dimension Hp is kept as one K block (fine up to a
    # few thousand); for very large Hp it should additionally be K-tiled.
    xp, M, Mp, tm, Hp, Vp, tv = _decoder_setup(x2d, w1, w2)
    out = pl.pallas_call(
        _decoder_logits_kernel,
        out_shape=jax.ShapeDtypeStruct((Mp, Vp), jnp.float32),
        grid=(Mp // tm, Vp // tv),
        in_specs=_decoder_specs(tm, Hp, tv),
        out_specs=pl.BlockSpec((tm, tv), lambda i, j: (i, j)),
        scratch_shapes=[pltpu.VMEM((tm, Hp), jnp.bfloat16)],
        compiler_params=pltpu.CompilerParams(
            dimension_semantics=("parallel", "arbitrary"),
            vmem_limit_bytes=_VMEM_LIMIT),
    )(xp, w1, b1, w2, b2)
    return out[:M, :n_vocab]


def fused_decoder_argmax(x2d, w1, b1, w2, b2, *, n_vocab):
    """relu(x@W1+b1)@W2+b2 -> argmax over vocab, fully fused (no logits HBM)."""
    xp, M, Mp, tm, Hp, Vp, tv = _decoder_setup(x2d, w1, w2)
    out = pl.pallas_call(
        functools.partial(_decoder_argmax_kernel, n_vocab=n_vocab),
        out_shape=jax.ShapeDtypeStruct((Mp, 128), jnp.int32),
        grid=(Mp // tm, Vp // tv),
        in_specs=_decoder_specs(tm, Hp, tv),
        out_specs=pl.BlockSpec((tm, 128), lambda i, j: (i, 0)),
        scratch_shapes=[pltpu.VMEM((tm, Hp), jnp.bfloat16),
                        pltpu.VMEM((tm, 1), jnp.float32),
                        pltpu.VMEM((tm, 1), jnp.int32)],
        compiler_params=pltpu.CompilerParams(
            dimension_semantics=("parallel", "arbitrary"),
            vmem_limit_bytes=_VMEM_LIMIT),
    )(xp, w1, b1, w2, b2)
    return out[:M, 0]


# ----------------------------------------------------------------------------
# Kernel 3: length-prediction head
#   logits = cls @ length_embed.weight.T ; logits[:, 0] += -inf ; log_softmax
#   (length_embed is pre-transposed to (Hp, Lp) at init -> plain jnp.dot)
# ----------------------------------------------------------------------------
def _length_head_kernel(cls_ref, w_ref, o_ref, *, num_valid):
    logits = jnp.dot(cls_ref[...], w_ref[...],
                     preferred_element_type=jnp.float32)          # (Bp, Lp)
    col = jax.lax.broadcasted_iota(jnp.int32, logits.shape, 1)
    masked = jnp.logical_or(col == 0, col >= num_valid)           # class 0 + pad
    logits = jnp.where(masked, -jnp.inf, logits)
    m = jnp.max(logits, axis=-1, keepdims=True)
    lse = jnp.log(jnp.sum(jnp.exp(logits - m), axis=-1, keepdims=True))
    o_ref[...] = logits - m - lse                                 # log_softmax


def length_head(cls, length_embed_t, num_len_classes):
    B, Hp = cls.shape
    Lp = length_embed_t.shape[1]
    Bp = _round_up(max(B, 16), 16)           # full sublanes -> unmasked stores
    cls_p = _pad2d(cls, Bp, Hp, jnp.bfloat16)
    out = pl.pallas_call(
        functools.partial(_length_head_kernel, num_valid=num_len_classes),
        out_shape=jax.ShapeDtypeStruct((Bp, Lp), jnp.float32),
        in_specs=[pl.BlockSpec(memory_space=pltpu.MemorySpace.VMEM)] * 2,
        out_specs=pl.BlockSpec(memory_space=pltpu.MemorySpace.VMEM),
    )(cls_p, length_embed_t)
    return out[:B, :num_len_classes]


# ----------------------------------------------------------------------------
# Kernel 4: GLAT token merge
#   same_num = sum((pred==target)&nonpad) ; seq_lens = sum(nonpad)
#   keep_prob = (seq_lens - same_num) / seq_lens * 0.5   (guarded)
#   keep = rand < keep_prob
#   prev = where(keep, target, input) ; tgt = where(keep, 1, target)
# ----------------------------------------------------------------------------
def _glat_merge_kernel(pred_ref, target_ref, input_ref, mask_ref, rand_ref,
                       prev_ref, tgt_ref):
    pred = pred_ref[...]
    target = target_ref[...]
    inp = input_ref[...]
    valid = mask_ref[...] != 0
    same = jnp.sum(jnp.logical_and(pred == target, valid).astype(jnp.float32),
                   axis=1, keepdims=True)
    lens = jnp.sum(valid.astype(jnp.float32), axis=1, keepdims=True)
    keep_prob = (lens - same) / jnp.maximum(lens, 1.0) * 0.5  # guard all-pad rows
    keep = rand_ref[...] < keep_prob
    prev_ref[...] = jnp.where(keep, target, inp)
    tgt_ref[...] = jnp.where(keep, jnp.ones_like(target), target)


def glat_mix(pred_tokens, nat_target, nat_txt_input, nonpad_mask, rand):
    B, T = nat_target.shape
    Tp = _round_up(T, 128)
    pred_p = _pad2d(pred_tokens, B, Tp, jnp.int32)
    tgt_p = _pad2d(nat_target, B, Tp, jnp.int32)
    inp_p = _pad2d(nat_txt_input, B, Tp, jnp.int32)
    msk_p = _pad2d(nonpad_mask, B, Tp, jnp.int32)
    rnd_p = _pad2d(rand, B, Tp, jnp.float32, fill=1.0)

    prev_p, gtgt_p = pl.pallas_call(
        _glat_merge_kernel,
        out_shape=(jax.ShapeDtypeStruct((B, Tp), jnp.int32),
                   jax.ShapeDtypeStruct((B, Tp), jnp.int32)),
        in_specs=[pl.BlockSpec(memory_space=pltpu.MemorySpace.VMEM)] * 5,
        out_specs=(pl.BlockSpec(memory_space=pltpu.MemorySpace.VMEM),
                   pl.BlockSpec(memory_space=pltpu.MemorySpace.VMEM)),
    )(pred_p, tgt_p, inp_p, msk_p, rnd_p)
    return prev_p[:, :T], gtgt_p[:, :T]


# ----------------------------------------------------------------------------
# Model glue (parameter setup, reshapes, embedding gathers)
# ----------------------------------------------------------------------------
def init_params(key, feat_dim, hidden, vocab, txt_vocab, max_len):
    ks = jax.random.split(key, 9)
    s = 0.05
    Fp, Hp = _round_up(feat_dim, 128), _round_up(hidden, 128)
    Vp, Lp = _round_up(vocab, 128), _round_up(max_len, 128)

    def w(k, r, c, rp, cp):          # padded + bf16 once, at init
        return _pad2d(jax.random.normal(k, (r, c), jnp.float32) * s, rp, cp,
                      jnp.bfloat16)

    length_tok = jax.random.normal(ks[1], (1, 1, hidden), jnp.float32) * s
    length_tok = jnp.zeros((1, 1, Hp), jnp.bfloat16).at[:, :, :hidden].set(
        length_tok.astype(jnp.bfloat16))
    length_embed = jax.random.normal(ks[3], (max_len, hidden), jnp.float32) * s

    return {
        "dims": {"F": feat_dim, "H": hidden, "V": vocab, "L": max_len,
                 "Fp": Fp, "Hp": Hp, "Vp": Vp, "Lp": Lp},
        "w_sgn": w(ks[0], feat_dim, hidden, Fp, Hp),
        "b_sgn": jnp.zeros((1, Hp), jnp.float32),
        "length_token": length_tok,
        "w_enc": w(ks[2], hidden, hidden, Hp, Hp),
        "b_enc": jnp.zeros((1, Hp), jnp.float32),
        # pre-transposed (H, L): the length head is then a plain jnp.dot
        "length_embed_t": _pad2d(length_embed.T, Hp, Lp, jnp.bfloat16),
        "txt_embed": _pad2d(jax.random.normal(ks[4], (txt_vocab, hidden),
                                              jnp.float32) * s,
                            txt_vocab, Hp, jnp.bfloat16),
        "w_dec": w(ks[5], hidden, hidden, Hp, Hp),
        "b_dec": jnp.zeros((1, Hp), jnp.float32),
        "w_out": w(ks[6], hidden, vocab, Hp, Vp),
        "b_out": jnp.zeros((1, Vp), jnp.float32),
    }


def encode(params, sgn, sgn_mask):
    # SpatialEmbeddings stand-in: per-frame linear projection with the mask
    # multiply fused into the kernel epilogue; bf16 padded-lane output slab.
    b, s, _ = sgn.shape
    Hp = params["dims"]["Hp"]
    emb = fused_linear(sgn.reshape(b * s, -1), params["w_sgn"], params["b_sgn"],
                       row_scale=sgn_mask.reshape(b * s).astype(jnp.float32),
                       out_dtype=jnp.bfloat16)
    emb = emb.reshape(b, s, Hp)
    # Prepend length token so that x[:, 0, :] is the length-prediction state.
    len_tok = jnp.broadcast_to(params["length_token"], (b, 1, Hp))
    x = jnp.concatenate([len_tok, emb], axis=1)                  # (B, S+1, Hp)
    # TODO(synk): real Encoder is an undefined multi-layer transformer;
    # stand-in = linear with the ReLU fused into the kernel epilogue.
    enc = fused_linear(x.reshape(b * (s + 1), Hp), params["w_enc"],
                       params["b_enc"], relu=True, out_dtype=jnp.bfloat16)
    return enc.reshape(b, s + 1, Hp), None


def nat_decoder_forward(params, txt_input, encoder_output2, sgn_mask, *,
                        return_argmax=False):
    # TODO(synk): real nat_decoder is an undefined NAT transformer decoder;
    # stand-in = embedding gather + masked-mean context + fused 2-layer head.
    V = params["dims"]["V"]
    trg_embed = params["txt_embed"][txt_input]          # (B, T, Hp) gather glue
    b, t, hp = trg_embed.shape
    m = sgn_mask.astype(jnp.float32)[..., None]         # mask-correct mean
    ctx = (jnp.sum(encoder_output2.astype(jnp.float32) * m, axis=1,
                   keepdims=True)
           / jnp.maximum(jnp.sum(m, axis=1, keepdims=True), 1.0))
    x2d = (trg_embed.astype(jnp.float32) + ctx).reshape(b * t, hp)
    if return_argmax:
        pred = fused_decoder_argmax(x2d, params["w_dec"], params["b_dec"],
                                    params["w_out"], params["b_out"],
                                    n_vocab=V)
        return pred.reshape(b, t)
    logits = fused_decoder_logits(x2d, params["w_dec"], params["b_dec"],
                                  params["w_out"], params["b_out"], n_vocab=V)
    return logits.reshape(b, t, V)


def sign_model_forward(params, rng, nat_target, sgn, sgn_mask, sgn_lengths,
                       nat_txt_input, nat_txt_mask):
    x, encoder_hidden = encode(params, sgn, sgn_mask)

    # length prediction head (exact semantics of the reference)
    cls = x[:, 0, :]
    predicted_lengths2 = length_head(cls, params["length_embed_t"],
                                     params["dims"]["L"])
    encoder_output2 = x[:, 1:, :]

    # first decode pass (torch: no_grad + torch_seed). softmax is monotonic,
    # so argmax(softmax(logits)) == argmax(logits); it is computed fused into
    # the decoder epilogue — the first-pass logits never reach HBM.
    pred_tokens = nat_decoder_forward(params, nat_txt_input, encoder_output2,
                                      sgn_mask, return_argmax=True)
    nonpad = nat_txt_mask[:, 0, :].astype(jnp.int32)             # .squeeze(1)
    # TODO(synk): torch draws torch.rand under torch_seed(rand_seed); we draw
    # the equivalent uniform stream with jax.random (the TPU in-kernel PRNG
    # has no interpret/CPU lowering) — same distribution, different stream.
    rand = jax.random.uniform(rng, nat_txt_input.shape, jnp.float32)
    glat_prev_output_tokens, tgt_tokens = glat_mix(
        pred_tokens, nat_target, nat_txt_input, nonpad, rand)

    # second decode pass with GLAT-mixed inputs (same stand-in decoder)
    word_outputs_2 = nat_decoder_forward(params, glat_prev_output_tokens,
                                         encoder_output2, sgn_mask,
                                         return_argmax=False)
    decoder_outputs = ((word_outputs_2,), None, None, None)
    return decoder_outputs, None, predicted_lengths2, tgt_tokens


# ----------------------------------------------------------------------------
if __name__ == "__main__":
    B, S, F, H, T, V, L = 2, 8, 16, 32, 6, 16, 16
    key = jax.random.PRNGKey(0)
    kp, kx, ki, kt, kr = jax.random.split(key, 5)

    params = init_params(kp, feat_dim=F, hidden=H, vocab=V, txt_vocab=V,
                         max_len=L)

    sgn = jax.random.normal(kx, (B, S, F), jnp.float32)
    sgn_mask = jnp.ones((B, S), jnp.int32).at[1, 6:].set(0)      # some padding
    sgn_lengths = jnp.array([S, 6], jnp.int32)
    nat_txt_input = jax.random.randint(ki, (B, T), 2, V, jnp.int32)
    nat_target = jax.random.randint(kt, (B, T), 2, V, jnp.int32)
    nat_txt_mask = jnp.ones((B, 1, T), jnp.int32).at[1, 0, 4:].set(0)

    outs = sign_model_forward(params, kr, nat_target, sgn, sgn_mask,
                              sgn_lengths, nat_txt_input, nat_txt_mask)
    decoder_outputs, _, predicted_lengths2, tgt_tokens = outs
    jax.block_until_ready(decoder_outputs[0][0])
    jax.block_until_ready(predicted_lengths2)
    jax.block_until_ready(tgt_tokens)

    assert decoder_outputs[0][0].shape == (B, T, V)
    assert predicted_lengths2.shape == (B, L)
    assert tgt_tokens.shape == (B, T)
    print("KERNEL_OK")
</pallas_src>

<mosaic_0001>
module attributes {stable_mosaic.version = 11 : i64} {
  func.func @_linear_kernel(%arg0: i32, %arg1: i32, %arg2: i32, %arg3: memref<16x128xbf16, #tpu.memory_space<vmem>>, %arg4: memref<128x128xbf16, #tpu.memory_space<vmem>>, %arg5: memref<1x128xf32, #tpu.memory_space<vmem>>, %arg6: memref<16x1xf32, #tpu.memory_space<vmem>>, %arg7: memref<16x128xbf16, #tpu.memory_space<vmem>>, %arg8: memref<16x128xf32, #tpu.memory_space<vmem>>) attributes {dimension_semantics = [#tpu.dimension_semantics<parallel>, #tpu.dimension_semantics<parallel>, #tpu.dimension_semantics<arbitrary>], iteration_bounds = array<i64: 1, 1, 1>, scalar_prefetch = 0 : i64, scratch_operands = 1 : i64, tpu.core_type = #tpu.core_type<tc>, window_params = [{transform_indices = @transform_0, window_bounds = array<i64: 16, 128>}, {transform_indices = @transform_1, window_bounds = array<i64: 128, 128>}, {transform_indices = @transform_2, window_bounds = array<i64: 1, 128>}, {transform_indices = @transform_3, window_bounds = array<i64: 16, 1>}, {transform_indices = @transform_4, window_bounds = array<i64: 16, 128>}]} {
    %c0_i32 = arith.constant 0 : i32
    %0 = arith.cmpi eq, %arg2, %c0_i32 : i32
    %1 = arith.extui %0 : i1 to i32
    %c0_i32_0 = arith.constant 0 : i32
    %2 = arith.cmpi ne, %1, %c0_i32_0 : i32
    scf.if %2 {
      %cst_10 = arith.constant 0.000000e+00 : f32
      %12 = vector.broadcast %cst_10 : f32 to vector<16x128xf32>
      %c0_11 = arith.constant 0 : index
      %c0_12 = arith.constant 0 : index
      %13 = vector.load %arg8[%c0_11, %c0_12] : memref<16x128xf32, #tpu.memory_space<vmem>>, vector<16x128xf32>
      tpu.vector_store %arg8[%c0_11, %c0_12], %12 {strides = array<i32>} : memref<16x128xf32, #tpu.memory_space<vmem>>, vector<16x128xf32>,
    } else {
    }
    %c0 = arith.constant 0 : index
    %c0_1 = arith.constant 0 : index
    %3 = vector.load %arg8[%c0, %c0_1] : memref<16x128xf32, #tpu.memory_space<vmem>>, vector<16x128xf32>
    %c0_2 = arith.constant 0 : index
    %c0_3 = arith.constant 0 : index
    %4 = vector.load %arg3[%c0_2, %c0_3] : memref<16x128xbf16, #tpu.memory_space<vmem>>, vector<16x128xbf16>
    %c0_4 = arith.constant 0 : index
    %c0_5 = arith.constant 0 : index
    %5 = vector.load %arg4[%c0_4, %c0_5] : memref<128x128xbf16, #tpu.memory_space<vmem>>, vector<128x128xbf16>
    %cst = arith.constant dense<0.000000e+00> : vector<16x128xf32>
    %6 = tpu.matmul %4, %5, %cst {dimension_numbers = #tpu.dot_dimension_numbers<[1], [0], [0], [1], [0, 0, 1, 1], [], []>} : vector<16x128xbf16>, vector<128x128xbf16>, vector<16x128xf32> -> vector<16x128xf32>
    %7 = arith.addf %3, %6 : vector<16x128xf32>
    %c0_6 = arith.constant 0 : index
    %c0_7 = arith.constant 0 : index
    %8 = vector.load %arg8[%c0_6, %c0_7] : memref<16x128xf32, #tpu.memory_space<vmem>>, vector<16x128xf32>
    tpu.vector_store %arg8[%c0_6, %c0_7], %7 {strides = array<i32>} : memref<16x128xf32, #tpu.memory_space<vmem>>, vector<16x128xf32>,
    %c0_i32_8 = arith.constant 0 : i32
    %9 = arith.cmpi eq, %arg2, %c0_i32_8 : i32
    %10 = arith.extui %9 : i1 to i32
    %c0_i32_9 = arith.constant 0 : i32
    %11 = arith.cmpi ne, %10, %c0_i32_9 : i32
    scf.if %11 {
      %c0_10 = arith.constant 0 : index
      %c0_11 = arith.constant 0 : index
      %12 = vector.load %arg8[%c0_10, %c0_11] : memref<16x128xf32, #tpu.memory_space<vmem>>, vector<16x128xf32>
      %c0_12 = arith.constant 0 : index
      %c0_13 = arith.constant 0 : index
      %13 = vector.load %arg5[%c0_12, %c0_13] : memref<1x128xf32, #tpu.memory_space<vmem>>, vector<1x128xf32>
      %14 = vector.broadcast %13 : vector<1x128xf32> to vector<16x128xf32>
      %15 = arith.addf %12, %14 : vector<16x128xf32>
      %c0_14 = arith.constant 0 : index
      %c0_15 = arith.constant 0 : index
      %16 = vector.load %arg6[%c0_14, %c0_15] : memref<16x1xf32, #tpu.memory_space<vmem>>, vector<16x1xf32>
      %17 = vector.broadcast %16 : vector<16x1xf32> to vector<16x128xf32>
      %18 = arith.mulf %15, %17 : vector<16x128xf32>
      %19 = arith.truncf %18 : vector<16x128xf32> to vector<16x128xbf16>
      %c0_16 = arith.constant 0 : index
      %c0_17 = arith.constant 0 : index
      %20 = vector.load %arg7[%c0_16, %c0_17] : memref<16x128xbf16, #tpu.memory_space<vmem>>, vector<16x128xbf16>
      tpu.vector_store %arg7[%c0_16, %c0_17], %19 {strides = array<i32>} : memref<16x128xbf16, #tpu.memory_space<vmem>>, vector<16x128xbf16>,
    } else {
    }
    return
  }
  func.func @transform_0(%arg0: i32, %arg1: i32, %arg2: i32) -> (i32, i32) {
    %c0_i32 = arith.constant 0 : i32
    return %arg0, %arg2 : i32, i32
  }
  func.func @transform_1(%arg0: i32, %arg1: i32, %arg2: i32) -> (i32, i32) {
    %c0_i32 = arith.constant 0 : i32
    return %arg2, %arg1 : i32, i32
  }
  func.func @transform_2(%arg0: i32, %arg1: i32, %arg2: i32) -> (i32, i32) {
    %c0_i32 = arith.constant 0 : i32
    %c0_i32_0 = arith.constant 0 : i32
    return %c0_i32, %arg1 : i32, i32
  }
  func.func @transform_3(%arg0: i32, %arg1: i32, %arg2: i32) -> (i32, i32) {
    %c0_i32 = arith.constant 0 : i32
    %c0_i32_0 = arith.constant 0 : i32
    return %arg0, %c0_i32 : i32, i32
  }
  func.func @transform_4(%arg0: i32, %arg1: i32, %arg2: i32) -> (i32, i32) {
    %c0_i32 = arith.constant 0 : i32
    return %arg0, %arg1 : i32, i32
  }
}

</mosaic_0001>

<bundles_post_ra>
// kernel: tpu_custom_call.1
= control target key start
LH: loop header
LB: loop body
LE: loop exit
PB: predicated region body
PF: predicated region fallthrough
CT: control target
= control target key end

     0   :  { %9 = vsyncpa [#allocation4], 0  ;;  %s378_s0 = inlined_call_operand.vmem [shape: bf16[16,128], index: 0, kind: input, shape index: {}]   ;;  %s379_s1 = inlined_call_operand.hbm [shape: bf16[128,128], index: 1, kind: input, shape index: {}]   ;;  %s380_s2 = inlined_call_operand.vmem [shape: f32[1,128], index: 2, kind: input, shape index: {}]   ;;  %s381_s3 = inlined_call_operand.vmem [shape: f32[16,1], index: 3, kind: input, shape index: {}]   ;;  %s382_s4 = inlined_call_operand.hbm [shape: bf16[16,128], index: 4, kind: output, shape index: {}]  }
   0x1   :  { %10 = vsyncpa [#allocation5], 0  ;;  %s322_s15 = smov [#allocation3]  }
   0x2   :  { %s18_s16 = sshll.u32 %s322_s15, 4  ;;  %s19_s16 = int_to_ptr.vmem [resolvable:$true] %s18_s16 }
   0x3   :  { %s286_s17 = scalar_lea.vmem %s19_s16, 1024  ;;  %p291_p1 = scmp.lt.s32.totalorder %s19_s16, %s19_s16 }
   0x4   :  { %p287_p0 = scmp.ne.s32.totalorder %s19_s16, %s286_s17  ;;  %p292_p2 = scmp.lt.s32.totalorder %s286_s17, %s286_s17 }
   0x6   :  { %p293_p3 = por %p292_p2, %p291_p1 }
   0x8   :  { %p294_p4 = pnand %p293_p3, %p287_p0 }
   0xa   :  { %297 = shalt.err (!%p294_p4)
}
   0xb   :  { %s323_s18 = smov 64   ;;  %s324_s19 = smov 4  }
   0xc   :  { %24 = dma.hbm_to_vmem [thread:$0]  %s379_s1, 1024, %s19_s16, [#allocation4], %s323_s18, %s323_s18, %s324_s19  }
   0xd   :  { %318 = dma.done.wait [#allocation4], 1024  }
   0xe   :  { %319 = vsyncadd [#allocation4], 4294966272  ;;  %v325_v0 = vmov 0.0   ;;  %vm326_vm0 = vmmov 0   ;;  %v327_v1 = vmov 0   ;;  %v269_v2 = vld [vmem:[#allocation3 + $0x38] sm:$0xff]  }
   0xf   :  { %241 = vmatprep.subr.bf16.mxu0 %v325_v0  ;;  %257 = vmatprep.mubr.msk.bf16.mxu0 %vm326_vm0, %v325_v0  ;;  %v270_v3 = vld [vmem:[#allocation3 + $0x30] sm:$0xff]   ;;  %v271_v4 = vld [vmem:[#allocation3 + $0x28] sm:$0xff]   ;;  %v172_v5 = vld [vmem:[%s381_s3] sm:$0xff]  ;;  %s328_s28 = smov [#allocation6]  }
  0x10   :  { %268 = vset.pattern.permute.xlu0 %v327_v1  ;;  %242 = vmatpush3.bf16.msra.mxu0 %v269_v2  ;;  %v272_v6 = vld [vmem:[#allocation3 + $0x20] sm:$0xff]   ;;  %v173_v7 = vld [vmem:[%s381_s3 + $0x8] sm:$0xff]  ;;  %v273_v8 = vld [vmem:[#allocation3 + $0x18] sm:$0xff]   ;;  %s201_s29 = sshll.u32 %s328_s28, 4  ;;  %s202_s29 = int_to_ptr.vmem [resolvable:$true] %s201_s29 }
  0x11   :  { %243 = vmatprep.subr.bf16.mxu0 %v325_v0  ;;  %176 = vperm.xlu0 %268, %v172_v5   ;;  %v274_v9 = vld [vmem:[#allocation3 + $0x10] sm:$0xff]   ;;  %v275_v10 = vld [vmem:[#allocation3 + $0x8] sm:$0xff]   ;;  %v276_v11 = vld [vmem:[#allocation3] sm:$0xff]   ;;  %p303_p6 = scmp.lt.s32.totalorder %s202_s29, %s202_s29 }
  0x12   :  { %v277_v12 = vld [vmem:[%s378_s0] sm:$0xff]   ;;  %s298_s0 = scalar_lea.vmem %s202_s29, 128 }
  0x13   :  { %v222_v15 = vld [vmem:[%s380_s2] ss:$0 sm:$0xff]  ;;  %p299_p5 = scmp.ne.s32.totalorder %s202_s29, %s298_s0  ;;  %p304_p7 = scmp.lt.s32.totalorder %s298_s0, %s298_s0 }
  0x14   :  { %244 = vmatpush3.bf16.msra.mxu0 %v270_v3 }
  0x15   :  { %245 = vmatprep.subr.bf16.mxu0 %v325_v0  ;;  %181 = vperm.xlu0 %268, %v173_v7   ;;  %p305_p8 = por %p304_p7, %p303_p6 }
  0x17   :  { %p306_p9 = pnand %p305_p8, %p299_p5 }
  0x18   :  { %246 = vmatpush3.bf16.msra.mxu0 %v271_v4 }
  0x19   :  { %247 = vmatprep.subr.bf16.mxu0 %v325_v0 }
  0x1c   :  { %248 = vmatpush3.bf16.msra.mxu0 %v272_v6 }
  0x1d   :  { %249 = vmatprep.subr.bf16.mxu0 %v325_v0 }
  0x20   :  { %250 = vmatpush3.bf16.msra.mxu0 %v273_v8 }
  0x21   :  { %251 = vmatprep.subr.bf16.mxu0 %v325_v0 }
  0x24   :  { %252 = vmatpush3.bf16.msra.mxu0 %v274_v9 }
  0x25   :  { %253 = vmatprep.subr.bf16.mxu0 %v325_v0 }
  0x28   :  { %254 = vmatpush3.bf16.msra.mxu0 %v275_v10 }
  0x29   :  { %255 = vmatprep.subr.bf16.mxu0 %v325_v0 }
  0x2c   :  { %256 = vmatpush3.bf16.msra.mxu0 %v276_v11 }
  0x2f   :  { %258 = vmatmul.mubr.bf16.vlgmr.msra.gmra.mxu0 %v277_v12 }
  0x8c   :  { %v177_v13 = vpop.permute.xlu0 %176 }
  0x90   :  { %v182_v20 = vpop.permute.xlu0 %181 }
  0xef   :  { %v147_v14 = vpop.f32.mrf.mxu0 }
  0xf0   :  { %v170_v17 = vadd.f32 %v222_v15, %v147_v14 }
  0xf1   :  { %v259_v16 = vpop.f32.mrf.mxu0 }
  0xf2   :  { %v184_v22 = vmul.f32 %v177_v13, %v170_v17 }
  0xf3   :  { %v150_v18 = vpop.f32.mrf.mxu0 }
  0xf4   :  { %v171_v19 = vadd.f32 %v222_v15, %v150_v18 }
  0xf5   :  { %v260_v21 = vpop.f32.mrf.mxu0 }
  0xf6   :  { %v185_v23 = vmul.f32 %v182_v20, %v171_v19 }
  0xf8   :  { %v230_v24 = vpack.c.bf16 %v185_v23, %v184_v22 }
  0xfa   :  { %231 = vst [vmem:[#allocation6] sm:$0xff] %v230_v24  }
  0xfb   :  { %309 = shalt.err (!%p306_p9)
}
  0xfc   :  { %207 = dma.vmem_to_hbm [thread:$0]  %s202_s29, 128, %s382_s4, [#allocation5], %s323_s18, %s323_s18, %s324_s19  }
  0xfd   :  { %320 = dma.done.wait [#allocation5], 128  }
  0xfe   :  { %321 = vsyncadd [#allocation5], 4294967168 }
  0xff   :  { %211 = vsyncpa [#allocation4], 1 }
 0x100   :  { %212 = vsyncpa [#allocation5], 1 }

</bundles_post_ra>
